<compile_context>
chip_gen: v5e
topology: v5e:2x2
jax: 0.10.0
libtpu: 0.0.40
codegen_flags: <defaults>
</compile_context>

<pallas_src>
import jax
import jax.numpy as jnp
from jax.experimental import pallas as pl
from jax.experimental.pallas import tpu as pltpu


def _round_up(x, m):
    return ((x + m - 1) // m) * m


def _glimpse_kernel(tv_ref, params_ref, out_ref):
    # tv:     (TB, 2T+1)  = [timesteps | values | l_t]        (batch-major)
    # params: (NG+3, PW)  = [wg rows 0..NG-1 | lin | wl | bias] (lane-padded)
    # out:    (TB, PW)    = [grep (nhid cols) | gmid | zero pad]
    tw = tv_ref.shape[1]
    T = (tw - 1) // 2
    NG = params_ref.shape[0] - 3

    tv = tv_ref[...]
    t = tv[:, :T]                  # (TB, T)
    v = tv[:, T:2 * T]             # (TB, T)
    lt = tv[:, 2 * T:2 * T + 1]    # (TB, 1)

    wg = params_ref[:NG, :]                # (NG, PW)
    lin = params_ref[NG:NG + 1, :NG]       # (1, NG)
    wl = params_ref[NG + 1:NG + 2, :]      # (1, PW)
    bias = params_ref[NG + 2:NG + 3, :]    # (1, PW)

    # glimpse reference timesteps (getGlimpseTimesteps + l_t shift)
    q = lin + lt                           # (TB, NG)

    # piecewise-linear interpolation with end clamping (interp1d semantics).
    # Unrolled segment loop: all work stays in (TB, NG)/(TB, 1) vregs.
    t0 = t[:, 0:1]
    tN = t[:, T - 1:T]
    g = (jnp.where(q < t0, v[:, 0:1], 0.0)
         + jnp.where(q >= tN, v[:, T - 1:T], 0.0))
    for k in range(T - 1):  # T is small & static here; fully unrolled
        t_lo = t[:, k:k + 1]
        t_hi = t[:, k + 1:k + 2]
        v_lo = v[:, k:k + 1]
        slope = (v[:, k + 1:k + 2] - v_lo) / (t_hi - t_lo)     # (TB, 1)
        seg = v_lo + slope * (q - t_lo)                        # (TB, NG)
        g = g + jnp.where(jnp.logical_and(q >= t_lo, q < t_hi), seg, 0.0)

    # fc(cat([g, l_t], dim=1)) with the gmid pick folded into the padded weight:
    #   out[:, :nhid] = g @ Wg + l_t * Wl + b      (l_t term is a VPU broadcast mul)
    #   out[:, nhid]  = g[:, NG//2]                (one-hot column inside wg)
    out = (jnp.dot(g, wg, preferred_element_type=jnp.float32)
           + lt * wl + bias)
    out_ref[...] = out                       # single lane-dense (TB, PW) store


class GlimpseNetworkPallas:
    def __init__(self, ninp, nhid, ngran, nglimpse, gwidth, key):
        del ninp  # unused for the linear adapter
        # TODO(synk): only the adapter='linear', gtype='flatten' path is implemented
        # (GaussianAdapter / RNNCell are not exercised by this forward pass).
        self.ngran = ngran
        self.nglimpse = nglimpse
        self.gwidth = gwidth
        self.nhid = nhid
        ng = ngran * nglimpse
        self.ng = ng
        feat = ng + 1

        # deterministic nn.Linear-style init
        kw, kb = jax.random.split(key)
        bound = 1.0 / float(feat) ** 0.5
        self.W = jax.random.uniform(kw, (nhid, feat), minval=-bound,
                                    maxval=bound, dtype=jnp.float32)
        self.b = jax.random.uniform(kb, (nhid,), minval=-bound,
                                    maxval=bound, dtype=jnp.float32)

        # getGlimpseTimesteps linspaces, flattened in (nglimpse, ngran) row-major
        # order == PyTorch's glimpse.reshape(B, -1)
        lins = [jnp.linspace(-gwidth * (i * 5 + 1) / 2.0,
                             gwidth * (i * 5 + 1) / 2.0,
                             nglimpse, dtype=jnp.float32)
                for i in range(ngran)]
        self.lin = jnp.stack(lins, axis=1).reshape(1, ng)

        # --- packed, lane-padded parameter slab (one resident input DMA) -----
        # width PW: multiple of 128, wide enough for nhid+1 (folded gmid column)
        # and for the NG linspace entries.
        pw = max(_round_up(nhid + 1, 128), _round_up(ng, 128))
        self.pw = pw
        mid = ng // 2
        wg = jnp.zeros((ng, pw), jnp.float32)
        wg = wg.at[:, :nhid].set(jnp.transpose(self.W[:, :ng]))
        wg = wg.at[mid, nhid].set(1.0)          # folds gmid into output column nhid
        lin_row = jnp.zeros((1, pw), jnp.float32).at[0, :ng].set(self.lin[0])
        wl_row = jnp.zeros((1, pw), jnp.float32).at[0, :nhid].set(self.W[:, ng])
        b_row = jnp.zeros((1, pw), jnp.float32).at[0, :nhid].set(self.b)
        self.params = jnp.concatenate([wg, lin_row, wl_row, b_row], axis=0)

    def __call__(self, timesteps, values, l_t, *, batch_tile=256):
        # timesteps/values: (T, B) time-major (as in the PyTorch module); l_t: (B, 1)
        t_bt = jnp.transpose(timesteps).astype(jnp.float32)   # (B, T)
        v_bt = jnp.transpose(values).astype(jnp.float32)      # (B, T)
        lt = l_t.astype(jnp.float32)                          # (B, 1)
        B, T = t_bt.shape

        # pack the three batch-varying inputs into one array -> one DMA per tile
        tv = jnp.concatenate([t_bt, v_bt, lt], axis=1)        # (B, 2T+1)

        # batch tile: multiple of 8 (sublanes / MXU rows); pad B up to it with
        # edge rows (keeps timesteps valid & sorted in the padding).
        tb = batch_tile if B >= batch_tile else _round_up(B, 8)
        bp = _round_up(B, tb)
        if bp != B:
            tv = jnp.pad(tv, ((0, bp - B), (0, 0)), mode="edge")

        ng, pw = self.ng, self.pw
        out = pl.pallas_call(
            _glimpse_kernel,
            out_shape=jax.ShapeDtypeStruct((bp, pw), jnp.float32),
            grid_spec=pltpu.PrefetchScalarGridSpec(
                num_scalar_prefetch=0,
                grid=(bp // tb,),
                in_specs=[
                    pl.BlockSpec((tb, 2 * T + 1), lambda i: (i, 0)),
                    pl.BlockSpec((ng + 3, pw), lambda i: (0, 0)),  # stays resident
                ],
                out_specs=pl.BlockSpec((tb, pw), lambda i: (i, 0)),
            ),
            compiler_params=pltpu.CompilerParams(
                dimension_semantics=("parallel",)),
        )(tv, self.params)

        grep = out[:B, :self.nhid]        # (B, nhid)
        gmid = out[:B, self.nhid]         # (B,) == g[:, NG//2]
        return grep, gmid


def _reference(net, timesteps, values, l_t):
    """Pure-JAX reference (jnp.interp clamps at the ends, matching scipy
    interp1d with fill_value=(v[0], v[-1]))."""
    t_bt = jnp.transpose(timesteps).astype(jnp.float32)
    v_bt = jnp.transpose(values).astype(jnp.float32)
    lt = l_t.astype(jnp.float32)
    q = net.lin + lt                                          # (B, NG)
    g = jax.vmap(lambda qq, tt, vv: jnp.interp(qq, tt, vv))(q, t_bt, v_bt)
    x = jnp.concatenate([g, lt], axis=1)
    grep = x @ jnp.transpose(net.W) + net.b
    return grep, g[:, net.ng // 2]


if __name__ == "__main__":
    key = jax.random.PRNGKey(0)
    k_t, k_v, k_l, k_p = jax.random.split(key, 4)

    # small shapes: T=8 time points, B=2 batch, ngran=2, nglimpse=8, nhid=32
    T, B = 8, 2
    ngran, nglimpse, gwidth, nhid, ninp = 2, 8, 0.5, 32, 1

    # sorted, distinct timesteps per batch element (time-major (T, B) layout)
    timesteps = jnp.sort(
        jax.random.uniform(k_t, (T, B), minval=-1.0, maxval=1.0,
                           dtype=jnp.float32), axis=0)
    values = jax.random.normal(k_v, (T, B), dtype=jnp.float32)
    l_t = jax.random.uniform(k_l, (B, 1), minval=-1.0, maxval=1.0,
                             dtype=jnp.float32)

    net = GlimpseNetworkPallas(ninp, nhid, ngran, nglimpse, gwidth, k_p)

    grep, g_mid = net(timesteps, values, l_t)
    grep = jax.block_until_ready(grep)
    g_mid = jax.block_until_ready(g_mid)

    grep_ref, g_mid_ref = _reference(net, timesteps, values, l_t)

    assert grep.shape == (B, nhid) and g_mid.shape == (B,)
    assert jnp.max(jnp.abs(grep - grep_ref)) < 1e-4
    assert jnp.max(jnp.abs(g_mid - g_mid_ref)) < 1e-4

    print("KERNEL_OK")
</pallas_src>

<mosaic_0001>
module attributes {stable_mosaic.version = 11 : i64} {
  func.func @_glimpse_kernel(%arg0: i32, %arg1: memref<8x17xf32, #tpu.memory_space<vmem>>, %arg2: memref<19x128xf32, #tpu.memory_space<vmem>>, %arg3: memref<8x128xf32, #tpu.memory_space<vmem>>) attributes {dimension_semantics = [#tpu.dimension_semantics<parallel>], iteration_bounds = array<i64: 1>, scalar_prefetch = 0 : i64, scratch_operands = 0 : i64, tpu.core_type = #tpu.core_type<tc>, window_params = [{transform_indices = @transform_0, window_bounds = array<i64: 8, 17>}, {pipeline_mode = #tpu.pipeline_mode<synchronous>, transform_indices = @transform_1, window_bounds = array<i64: 19, 128>}, {transform_indices = @transform_2, window_bounds = array<i64: 8, 128>}]} {
    %c0 = arith.constant 0 : index
    %c0_0 = arith.constant 0 : index
    %0 = vector.load %arg1[%c0, %c0_0] : memref<8x17xf32, #tpu.memory_space<vmem>>, vector<8x17xf32>
    %1 = vector.extract_strided_slice %0 {offsets = [0, 0], sizes = [8, 8], strides = [1, 1]} : vector<8x17xf32> to vector<8x8xf32>
    %2 = vector.extract_strided_slice %0 {offsets = [0, 8], sizes = [8, 8], strides = [1, 1]} : vector<8x17xf32> to vector<8x8xf32>
    %3 = vector.extract_strided_slice %0 {offsets = [0, 16], sizes = [8, 1], strides = [1, 1]} : vector<8x17xf32> to vector<8x1xf32>
    %c0_1 = arith.constant 0 : index
    %c0_2 = arith.constant 0 : index
    %4 = vector.load %arg2[%c0_1, %c0_2] : memref<19x128xf32, #tpu.memory_space<vmem>>, vector<16x128xf32>
    %c16 = arith.constant 16 : index
    %c0_3 = arith.constant 0 : index
    %5 = vector.load %arg2[%c16, %c0_3] : memref<19x128xf32, #tpu.memory_space<vmem>>, vector<1x16xf32>
    %c17 = arith.constant 17 : index
    %c0_4 = arith.constant 0 : index
    %6 = vector.load %arg2[%c17, %c0_4] : memref<19x128xf32, #tpu.memory_space<vmem>>, vector<1x128xf32>
    %c18 = arith.constant 18 : index
    %c0_5 = arith.constant 0 : index
    %7 = vector.load %arg2[%c18, %c0_5] : memref<19x128xf32, #tpu.memory_space<vmem>>, vector<1x128xf32>
    %8 = vector.broadcast %5 : vector<1x16xf32> to vector<8x16xf32>
    %9 = vector.broadcast %3 : vector<8x1xf32> to vector<8x16xf32>
    %10 = arith.addf %8, %9 : vector<8x16xf32>
    %11 = vector.extract_strided_slice %1 {offsets = [0, 0], sizes = [8, 1], strides = [1, 1]} : vector<8x8xf32> to vector<8x1xf32>
    %12 = vector.extract_strided_slice %1 {offsets = [0, 7], sizes = [8, 1], strides = [1, 1]} : vector<8x8xf32> to vector<8x1xf32>
    %13 = vector.broadcast %11 : vector<8x1xf32> to vector<8x16xf32>
    %14 = arith.cmpf olt, %10, %13 : vector<8x16xf32>
    %15 = vector.extract_strided_slice %2 {offsets = [0, 0], sizes = [8, 1], strides = [1, 1]} : vector<8x8xf32> to vector<8x1xf32>
    %cst = arith.constant 0.000000e+00 : f32
    %16 = vector.shape_cast %15 : vector<8x1xf32> to vector<8x1xf32>
    %17 = vector.broadcast %16 : vector<8x1xf32> to vector<8x16xf32>
    %18 = vector.broadcast %cst : f32 to vector<8x16xf32>
    %19 = arith.select %14, %17, %18 : vector<8x16xi1>, vector<8x16xf32>
    %20 = vector.broadcast %12 : vector<8x1xf32> to vector<8x16xf32>
    %21 = arith.cmpf oge, %10, %20 : vector<8x16xf32>
    %22 = vector.extract_strided_slice %2 {offsets = [0, 7], sizes = [8, 1], strides = [1, 1]} : vector<8x8xf32> to vector<8x1xf32>
    %cst_6 = arith.constant 0.000000e+00 : f32
    %23 = vector.shape_cast %22 : vector<8x1xf32> to vector<8x1xf32>
    %24 = vector.broadcast %23 : vector<8x1xf32> to vector<8x16xf32>
    %25 = vector.broadcast %cst_6 : f32 to vector<8x16xf32>
    %26 = arith.select %21, %24, %25 : vector<8x16xi1>, vector<8x16xf32>
    %27 = arith.addf %19, %26 : vector<8x16xf32>
    %28 = vector.extract_strided_slice %1 {offsets = [0, 0], sizes = [8, 1], strides = [1, 1]} : vector<8x8xf32> to vector<8x1xf32>
    %29 = vector.extract_strided_slice %1 {offsets = [0, 1], sizes = [8, 1], strides = [1, 1]} : vector<8x8xf32> to vector<8x1xf32>
    %30 = vector.extract_strided_slice %2 {offsets = [0, 0], sizes = [8, 1], strides = [1, 1]} : vector<8x8xf32> to vector<8x1xf32>
    %31 = vector.extract_strided_slice %2 {offsets = [0, 1], sizes = [8, 1], strides = [1, 1]} : vector<8x8xf32> to vector<8x1xf32>
    %32 = arith.subf %31, %30 : vector<8x1xf32>
    %33 = arith.subf %29, %28 : vector<8x1xf32>
    %34 = arith.divf %32, %33 : vector<8x1xf32>
    %35 = vector.broadcast %28 : vector<8x1xf32> to vector<8x16xf32>
    %36 = arith.subf %10, %35 : vector<8x16xf32>
    %37 = vector.broadcast %34 : vector<8x1xf32> to vector<8x16xf32>
    %38 = arith.mulf %37, %36 : vector<8x16xf32>
    %39 = vector.broadcast %30 : vector<8x1xf32> to vector<8x16xf32>
    %40 = arith.addf %39, %38 : vector<8x16xf32>
    %41 = vector.broadcast %28 : vector<8x1xf32> to vector<8x16xf32>
    %42 = arith.cmpf oge, %10, %41 : vector<8x16xf32>
    %43 = vector.broadcast %29 : vector<8x1xf32> to vector<8x16xf32>
    %44 = arith.cmpf olt, %10, %43 : vector<8x16xf32>
    %45 = arith.andi %42, %44 : vector<8x16xi1>
    %cst_7 = arith.constant 0.000000e+00 : f32
    %46 = vector.broadcast %cst_7 : f32 to vector<8x16xf32>
    %47 = arith.select %45, %40, %46 : vector<8x16xi1>, vector<8x16xf32>
    %48 = arith.addf %27, %47 : vector<8x16xf32>
    %49 = vector.extract_strided_slice %1 {offsets = [0, 1], sizes = [8, 1], strides = [1, 1]} : vector<8x8xf32> to vector<8x1xf32>
    %50 = vector.extract_strided_slice %1 {offsets = [0, 2], sizes = [8, 1], strides = [1, 1]} : vector<8x8xf32> to vector<8x1xf32>
    %51 = vector.extract_strided_slice %2 {offsets = [0, 1], sizes = [8, 1], strides = [1, 1]} : vector<8x8xf32> to vector<8x1xf32>
    %52 = vector.extract_strided_slice %2 {offsets = [0, 2], sizes = [8, 1], strides = [1, 1]} : vector<8x8xf32> to vector<8x1xf32>
    %53 = arith.subf %52, %51 : vector<8x1xf32>
    %54 = arith.subf %50, %49 : vector<8x1xf32>
    %55 = arith.divf %53, %54 : vector<8x1xf32>
    %56 = vector.broadcast %49 : vector<8x1xf32> to vector<8x16xf32>
    %57 = arith.subf %10, %56 : vector<8x16xf32>
    %58 = vector.broadcast %55 : vector<8x1xf32> to vector<8x16xf32>
    %59 = arith.mulf %58, %57 : vector<8x16xf32>
    %60 = vector.broadcast %51 : vector<8x1xf32> to vector<8x16xf32>
    %61 = arith.addf %60, %59 : vector<8x16xf32>
    %62 = vector.broadcast %49 : vector<8x1xf32> to vector<8x16xf32>
    %63 = arith.cmpf oge, %10, %62 : vector<8x16xf32>
    %64 = vector.broadcast %50 : vector<8x1xf32> to vector<8x16xf32>
    %65 = arith.cmpf olt, %10, %64 : vector<8x16xf32>
    %66 = arith.andi %63, %65 : vector<8x16xi1>
    %cst_8 = arith.constant 0.000000e+00 : f32
    %67 = vector.broadcast %cst_8 : f32 to vector<8x16xf32>
    %68 = arith.select %66, %61, %67 : vector<8x16xi1>, vector<8x16xf32>
    %69 = arith.addf %48, %68 : vector<8x16xf32>
    %70 = vector.extract_strided_slice %1 {offsets = [0, 2], sizes = [8, 1], strides = [1, 1]} : vector<8x8xf32> to vector<8x1xf32>
    %71 = vector.extract_strided_slice %1 {offsets = [0, 3], sizes = [8, 1], strides = [1, 1]} : vector<8x8xf32> to vector<8x1xf32>
    %72 = vector.extract_strided_slice %2 {offsets = [0, 2], sizes = [8, 1], strides = [1, 1]} : vector<8x8xf32> to vector<8x1xf32>
    %73 = vector.extract_strided_slice %2 {offsets = [0, 3], sizes = [8, 1], strides = [1, 1]} : vector<8x8xf32> to vector<8x1xf32>
    %74 = arith.subf %73, %72 : vector<8x1xf32>
    %75 = arith.subf %71, %70 : vector<8x1xf32>
    %76 = arith.divf %74, %75 : vector<8x1xf32>
    %77 = vector.broadcast %70 : vector<8x1xf32> to vector<8x16xf32>
    %78 = arith.subf %10, %77 : vector<8x16xf32>
    %79 = vector.broadcast %76 : vector<8x1xf32> to vector<8x16xf32>
    %80 = arith.mulf %79, %78 : vector<8x16xf32>
    %81 = vector.broadcast %72 : vector<8x1xf32> to vector<8x16xf32>
    %82 = arith.addf %81, %80 : vector<8x16xf32>
    %83 = vector.broadcast %70 : vector<8x1xf32> to vector<8x16xf32>
    %84 = arith.cmpf oge, %10, %83 : vector<8x16xf32>
    %85 = vector.broadcast %71 : vector<8x1xf32> to vector<8x16xf32>
    %86 = arith.cmpf olt, %10, %85 : vector<8x16xf32>
    %87 = arith.andi %84, %86 : vector<8x16xi1>
    %cst_9 = arith.constant 0.000000e+00 : f32
    %88 = vector.broadcast %cst_9 : f32 to vector<8x16xf32>
    %89 = arith.select %87, %82, %88 : vector<8x16xi1>, vector<8x16xf32>
    %90 = arith.addf %69, %89 : vector<8x16xf32>
    %91 = vector.extract_strided_slice %1 {offsets = [0, 3], sizes = [8, 1], strides = [1, 1]} : vector<8x8xf32> to vector<8x1xf32>
    %92 = vector.extract_strided_slice %1 {offsets = [0, 4], sizes = [8, 1], strides = [1, 1]} : vector<8x8xf32> to vector<8x1xf32>
    %93 = vector.extract_strided_slice %2 {offsets = [0, 3], sizes = [8, 1], strides = [1, 1]} : vector<8x8xf32> to vector<8x1xf32>
    %94 = vector.extract_strided_slice %2 {offsets = [0, 4], sizes = [8, 1], strides = [1, 1]} : vector<8x8xf32> to vector<8x1xf32>
    %95 = arith.subf %94, %93 : vector<8x1xf32>
    %96 = arith.subf %92, %91 : vector<8x1xf32>
    %97 = arith.divf %95, %96 : vector<8x1xf32>
    %98 = vector.broadcast %91 : vector<8x1xf32> to vector<8x16xf32>
    %99 = arith.subf %10, %98 : vector<8x16xf32>
    %100 = vector.broadcast %97 : vector<8x1xf32> to vector<8x16xf32>
    %101 = arith.mulf %100, %99 : vector<8x16xf32>
    %102 = vector.broadcast %93 : vector<8x1xf32> to vector<8x16xf32>
    %103 = arith.addf %102, %101 : vector<8x16xf32>
    %104 = vector.broadcast %91 : vector<8x1xf32> to vector<8x16xf32>
    %105 = arith.cmpf oge, %10, %104 : vector<8x16xf32>
    %106 = vector.broadcast %92 : vector<8x1xf32> to vector<8x16xf32>
    %107 = arith.cmpf olt, %10, %106 : vector<8x16xf32>
    %108 = arith.andi %105, %107 : vector<8x16xi1>
    %cst_10 = arith.constant 0.000000e+00 : f32
    %109 = vector.broadcast %cst_10 : f32 to vector<8x16xf32>
    %110 = arith.select %108, %103, %109 : vector<8x16xi1>, vector<8x16xf32>
    %111 = arith.addf %90, %110 : vector<8x16xf32>
    %112 = vector.extract_strided_slice %1 {offsets = [0, 4], sizes = [8, 1], strides = [1, 1]} : vector<8x8xf32> to vector<8x1xf32>
    %113 = vector.extract_strided_slice %1 {offsets = [0, 5], sizes = [8, 1], strides = [1, 1]} : vector<8x8xf32> to vector<8x1xf32>
    %114 = vector.extract_strided_slice %2 {offsets = [0, 4], sizes = [8, 1], strides = [1, 1]} : vector<8x8xf32> to vector<8x1xf32>
    %115 = vector.extract_strided_slice %2 {offsets = [0, 5], sizes = [8, 1], strides = [1, 1]} : vector<8x8xf32> to vector<8x1xf32>
    %116 = arith.subf %115, %114 : vector<8x1xf32>
    %117 = arith.subf %113, %112 : vector<8x1xf32>
    %118 = arith.divf %116, %117 : vector<8x1xf32>
    %119 = vector.broadcast %112 : vector<8x1xf32> to vector<8x16xf32>
    %120 = arith.subf %10, %119 : vector<8x16xf32>
    %121 = vector.broadcast %118 : vector<8x1xf32> to vector<8x16xf32>
    %122 = arith.mulf %121, %120 : vector<8x16xf32>
    %123 = vector.broadcast %114 : vector<8x1xf32> to vector<8x16xf32>
    %124 = arith.addf %123, %122 : vector<8x16xf32>
    %125 = vector.broadcast %112 : vector<8x1xf32> to vector<8x16xf32>
    %126 = arith.cmpf oge, %10, %125 : vector<8x16xf32>
    %127 = vector.broadcast %113 : vector<8x1xf32> to vector<8x16xf32>
    %128 = arith.cmpf olt, %10, %127 : vector<8x16xf32>
    %129 = arith.andi %126, %128 : vector<8x16xi1>
    %cst_11 = arith.constant 0.000000e+00 : f32
    %130 = vector.broadcast %cst_11 : f32 to vector<8x16xf32>
    %131 = arith.select %129, %124, %130 : vector<8x16xi1>, vector<8x16xf32>
    %132 = arith.addf %111, %131 : vector<8x16xf32>
    %133 = vector.extract_strided_slice %1 {offsets = [0, 5], sizes = [8, 1], strides = [1, 1]} : vector<8x8xf32> to vector<8x1xf32>
    %134 = vector.extract_strided_slice %1 {offsets = [0, 6], sizes = [8, 1], strides = [1, 1]} : vector<8x8xf32> to vector<8x1xf32>
    %135 = vector.extract_strided_slice %2 {offsets = [0, 5], sizes = [8, 1], strides = [1, 1]} : vector<8x8xf32> to vector<8x1xf32>
    %136 = vector.extract_strided_slice %2 {offsets = [0, 6], sizes = [8, 1], strides = [1, 1]} : vector<8x8xf32> to vector<8x1xf32>
    %137 = arith.subf %136, %135 : vector<8x1xf32>
    %138 = arith.subf %134, %133 : vector<8x1xf32>
    %139 = arith.divf %137, %138 : vector<8x1xf32>
    %140 = vector.broadcast %133 : vector<8x1xf32> to vector<8x16xf32>
    %141 = arith.subf %10, %140 : vector<8x16xf32>
    %142 = vector.broadcast %139 : vector<8x1xf32> to vector<8x16xf32>
    %143 = arith.mulf %142, %141 : vector<8x16xf32>
    %144 = vector.broadcast %135 : vector<8x1xf32> to vector<8x16xf32>
    %145 = arith.addf %144, %143 : vector<8x16xf32>
    %146 = vector.broadcast %133 : vector<8x1xf32> to vector<8x16xf32>
    %147 = arith.cmpf oge, %10, %146 : vector<8x16xf32>
    %148 = vector.broadcast %134 : vector<8x1xf32> to vector<8x16xf32>
    %149 = arith.cmpf olt, %10, %148 : vector<8x16xf32>
    %150 = arith.andi %147, %149 : vector<8x16xi1>
    %cst_12 = arith.constant 0.000000e+00 : f32
    %151 = vector.broadcast %cst_12 : f32 to vector<8x16xf32>
    %152 = arith.select %150, %145, %151 : vector<8x16xi1>, vector<8x16xf32>
    %153 = arith.addf %132, %152 : vector<8x16xf32>
    %154 = vector.extract_strided_slice %1 {offsets = [0, 6], sizes = [8, 1], strides = [1, 1]} : vector<8x8xf32> to vector<8x1xf32>
    %155 = vector.extract_strided_slice %1 {offsets = [0, 7], sizes = [8, 1], strides = [1, 1]} : vector<8x8xf32> to vector<8x1xf32>
    %156 = vector.extract_strided_slice %2 {offsets = [0, 6], sizes = [8, 1], strides = [1, 1]} : vector<8x8xf32> to vector<8x1xf32>
    %157 = vector.extract_strided_slice %2 {offsets = [0, 7], sizes = [8, 1], strides = [1, 1]} : vector<8x8xf32> to vector<8x1xf32>
    %158 = arith.subf %157, %156 : vector<8x1xf32>
    %159 = arith.subf %155, %154 : vector<8x1xf32>
    %160 = arith.divf %158, %159 : vector<8x1xf32>
    %161 = vector.broadcast %154 : vector<8x1xf32> to vector<8x16xf32>
    %162 = arith.subf %10, %161 : vector<8x16xf32>
    %163 = vector.broadcast %160 : vector<8x1xf32> to vector<8x16xf32>
    %164 = arith.mulf %163, %162 : vector<8x16xf32>
    %165 = vector.broadcast %156 : vector<8x1xf32> to vector<8x16xf32>
    %166 = arith.addf %165, %164 : vector<8x16xf32>
    %167 = vector.broadcast %154 : vector<8x1xf32> to vector<8x16xf32>
    %168 = arith.cmpf oge, %10, %167 : vector<8x16xf32>
    %169 = vector.broadcast %155 : vector<8x1xf32> to vector<8x16xf32>
    %170 = arith.cmpf olt, %10, %169 : vector<8x16xf32>
    %171 = arith.andi %168, %170 : vector<8x16xi1>
    %cst_13 = arith.constant 0.000000e+00 : f32
    %172 = vector.broadcast %cst_13 : f32 to vector<8x16xf32>
    %173 = arith.select %171, %166, %172 : vector<8x16xi1>, vector<8x16xf32>
    %174 = arith.addf %153, %173 : vector<8x16xf32>
    %cst_14 = arith.constant dense<0.000000e+00> : vector<8x128xf32>
    %175 = tpu.matmul %174, %4, %cst_14 {dimension_numbers = #tpu.dot_dimension_numbers<[1], [0], [0], [1], [0, 0, 1, 1], [], []>} : vector<8x16xf32>, vector<16x128xf32>, vector<8x128xf32> -> vector<8x128xf32>
    %176 = vector.broadcast %3 : vector<8x1xf32> to vector<8x128xf32>
    %177 = vector.broadcast %6 : vector<1x128xf32> to vector<8x128xf32>
    %178 = arith.mulf %176, %177 : vector<8x128xf32>
    %179 = arith.addf %175, %178 : vector<8x128xf32>
    %180 = vector.broadcast %7 : vector<1x128xf32> to vector<8x128xf32>
    %181 = arith.addf %179, %180 : vector<8x128xf32>
    %c0_15 = arith.constant 0 : index
    %c0_16 = arith.constant 0 : index
    %182 = vector.load %arg3[%c0_15, %c0_16] : memref<8x128xf32, #tpu.memory_space<vmem>>, vector<8x128xf32>
    tpu.vector_store %arg3[%c0_15, %c0_16], %181 {strides = array<i32>} : memref<8x128xf32, #tpu.memory_space<vmem>>, vector<8x128xf32>,
    return
  }
  func.func @transform_0(%arg0: i32) -> (i32, i32) {
    %c0_i32 = arith.constant 0 : i32
    %c0_i32_0 = arith.constant 0 : i32
    return %arg0, %c0_i32 : i32, i32
  }
  func.func @transform_1(%arg0: i32) -> (i32, i32) {
    %c0_i32 = arith.constant 0 : i32
    %c0_i32_0 = arith.constant 0 : i32
    %c0_i32_1 = arith.constant 0 : i32
    return %c0_i32, %c0_i32_0 : i32, i32
  }
  func.func @transform_2(%arg0: i32) -> (i32, i32) {
    %c0_i32 = arith.constant 0 : i32
    %c0_i32_0 = arith.constant 0 : i32
    return %arg0, %c0_i32 : i32, i32
  }
}

</mosaic_0001>

<bundles_post_ra>
// kernel: tpu_custom_call.1
= control target key start
LH: loop header
LB: loop body
LE: loop exit
PB: predicated region body
PF: predicated region fallthrough
CT: control target
= control target key end

     0   :  { %7 = vsyncpa [#allocation3], 0  ;;  %s521_s0 = inlined_call_operand.hbm [shape: f32[8,17], index: 0, kind: input, shape index: {}]   ;;  %s522_s1 = inlined_call_operand.hbm [shape: f32[19,128], index: 1, kind: input, shape index: {}]   ;;  %s523_s2 = inlined_call_operand.hbm [shape: f32[8,128], index: 2, kind: output, shape index: {}]  }
   0x1   :  { %8 = vsyncpa [#allocation6], 0 }
   0x2   :  { %9 = vsyncpa [#allocation4], 0  ;;  %s15_s11 = sshll.u32 %s521_s0, 4  ;;  %s409_s12 = smov [#allocation2]   ;;  %s16_s11 = int_to_ptr.hbm [resolvable:$true] %s15_s11 }
   0x3   :  { %s17_s13 = sshll.u32 %s409_s12, 4  ;;  %s25_s16 = sshll.u32 %s522_s1, 4  ;;  %s18_s13 = int_to_ptr.vmem [resolvable:$true] %s17_s13  ;;  %s26_s16 = int_to_ptr.hbm [resolvable:$true] %s25_s16 }
   0x4   :  { %20 = dma.hbm_to_vmem [thread:$0]  %s16_s11, 128, %s18_s13, [#allocation3]  }
   0x5   :  { %s410_s17 = smov [#allocation5]   ;;  %s411_s19 = smov 128  }
   0x6   :  { %s27_s18 = sshll.u32 %s410_s17, 4  ;;  %s412_s20 = smov 8   ;;  %s28_s18 = int_to_ptr.vmem [resolvable:$true] %s27_s18 }
   0x7   :  { %33 = dma.hbm_to_vmem [thread:$0]  %s26_s16, 384, %s28_s18, [#allocation6], %s411_s19, %s411_s19, %s412_s20  }
   0x8   :  { %403 = dma.done.wait [#allocation3], 128  }
   0x9   :  { %404 = vsyncadd [#allocation3], 4294967168 }
   0xa   :  { %405 = dma.done.wait [#allocation6], 384  }
   0xb   :  { %406 = vsyncadd [#allocation6], 4294966912  ;;  %v454_v0 = vld [vmem:[#allocation2] sm:$0xff]  ;;  %s413_s0 = smov 1   ;;  %v414_v1 = vmov 16   ;;  %v415_v2 = vmov 7  }
   0xc   :  { %76 = vrot.lane.b32.xlu0 %v454_v0, %s413_s0  ;;  %303 = vset.pattern.permute.xlu1 %v414_v1  ;;  %v416_v3 = vmov 0   ;;  %v417_v4 = vmov 1   ;;  %v418_v5 = vmov 8   ;;  %v419_v6 = vmov 15   ;;  %v326_v45 = vld [vmem:[#allocation5 + $0x10] ss:$0 sm:$0xff] }
   0xd   :  { %306 = vset.pattern.permute.xlu0 %v415_v2  ;;  %51 = vperm.xlu1 %303, %v454_v0   ;;  %v420_v7 = vmov 10   ;;  %v421_v10 = vmov 2   ;;  %v422_v11 = vmov 11   ;;  %v423_v12 = vmov 3   ;;  %v44_v49 = vld [vmem:[#allocation5 + $0x8] sm:$0xff]  ;;  %v43_v51 = vld [vmem:[#allocation5] sm:$0xff] }
   0xe   :  { %305 = vset.pattern.permute.xlu2 %v417_v4  ;;  %v424_v13 = vmov 5   ;;  %v425_v14 = vmov 9   ;;  %v426_v15 = vmov 4   ;;  %v427_v16 = vmov 12   ;;  %252 = vmatpush.msra.mxu0 %v44_v49  ;;  %s431_s1 = smov [#allocation7]   ;;  %s268_s24 = sshll.u32 %s523_s2, 4  ;;  %s269_s24 = int_to_ptr.hbm [resolvable:$true] %s268_s24 }
   0xf   :  { %109 = vperm.xlu2 %305, %v454_v0   ;;  %v428_v17 = vmov 14   ;;  %v429_v30 = vmov 6   ;;  %v430_v31 = vmov 13   ;;  %s266_s21 = sshll.u32 %s431_s1, 4  ;;  %s267_s21 = int_to_ptr.vmem [resolvable:$true] %s266_s21 }
  0x10   :  { %253 = vmatpush.msra.mxu0 %v43_v51 }
  0x15   :  { %304 = vset.pattern.permute.xlu1 %v416_v3 }
  0x16   :  { %56 = vperm.xlu1 %304, %v454_v0  }
  0x17   :  { %308 = vset.pattern.permute.xlu2 %v419_v6 }
  0x18   :  { %71 = vperm.xlu2 %308, %v454_v0  }
  0x1e   :  { %307 = vset.pattern.permute.xlu1 %v418_v5 }
  0x1f   :  { %61 = vperm.xlu1 %307, %v454_v0  }
  0x20   :  { %309 = vset.pattern.permute.xlu2 %v421_v10 }
  0x21   :  { %129 = vperm.xlu2 %309, %v454_v0  }
  0x27   :  { %312 = vset.pattern.permute.xlu1 %v420_v7 }
  0x28   :  { %143 = vperm.xlu1 %312, %v454_v0  }
  0x29   :  { %311 = vset.pattern.permute.xlu2 %v423_v12 }
  0x2a   :  { %149 = vperm.xlu2 %311, %v454_v0  }
  0x30   :  { %314 = vset.pattern.permute.xlu1 %v422_v11 }
  0x31   :  { %163 = vperm.xlu1 %314, %v454_v0  }
  0x32   :  { %316 = vset.pattern.permute.xlu2 %v427_v16 }
  0x33   :  { %183 = vperm.xlu2 %316, %v454_v0  }
  0x39   :  { %315 = vset.pattern.permute.xlu1 %v424_v13 }
  0x3a   :  { %189 = vperm.xlu1 %315, %v454_v0  }
  0x3b   :  { %317 = vset.pattern.permute.xlu2 %v425_v14 }
  0x42   :  { %318 = vset.pattern.permute.xlu1 %v420_v7 }
  0x69   :  { %v110_v32 = vpop.permute.xlu2 %109 }
  0x72   :  { %v72_v34 = vpop.permute.xlu2 %71 }
  0x7b   :  { %v130_v36 = vpop.permute.xlu2 %129 }
  0x7e   :  { %v77_v8 = vpop.permute.xlu0 %76 }
  0x7f   :  { %v79_v9 = vsub.f32 %v454_v0, %v77_v8  ;;  %v478_v33 = vpop.permute.xlu1 %51 }
  0x80   :  { %v485_v46 = vadd.f32 %v326_v45, %v478_v33 }
  0x81   :  { %81 = vrot.lane.b32.xlu0 %v79_v9, %s412_s20 }
  0x82   :  { %v116_v54 = vsub.f32 %v485_v46, %v110_v32  ;;  %vm112_vm7 = vcmp.lt.f32.partialorder %v485_v46, %v110_v32  ;;  %v136_v57 = vsub.f32 %v485_v46, %v130_v36  ;;  %vm127_vm8 = vcmp.ge.f32.partialorder %v485_v46, %v110_v32 }
  0x83   :  { %vm132_vm9 = vcmp.lt.f32.partialorder %v485_v46, %v130_v36  ;;  %vm147_vm11 = vcmp.ge.f32.partialorder %v485_v46, %v130_v36 }
  0x84   :  { %v150_v38 = vpop.permute.xlu2 %149  ;;  %vm133_vm13 = vmand %vm127_vm8, %vm132_vm9 }
  0x85   :  { %vm152_vm12 = vcmp.lt.f32.partialorder %v485_v46, %v150_v38  ;;  %v156_v2 = vsub.f32 %v485_v46, %v150_v38  ;;  %vm167_vm15 = vcmp.ge.f32.partialorder %v485_v46, %v150_v38 }
  0x86   :  { %vm153_vm14 = vmand %vm147_vm11, %vm152_vm12  ;;  %vm234_vm11 = vcmask 130048  }
  0x88   :  { %v57_v35 = vpop.permute.xlu1 %56 }
  0x89   :  { %66 = vperm.xlu0 %306, %v454_v0   ;;  %v99_v52 = vsub.f32 %v485_v46, %v57_v35  ;;  %vm59_vm4 = vcmp.lt.f32.partialorder %v485_v46, %v57_v35  ;;  %vm107_vm6 = vcmp.ge.f32.partialorder %v485_v46, %v57_v35  ;;  %v327_v35 = vld [vmem:[#allocation5 + $0x11] ss:$0 sm:$0xff] }
  0x8a   :  { %vm113_vm10 = vmand %vm107_vm6, %vm112_vm7  ;;  %v233_v36 = vmul.f32 %v327_v35, %v478_v33 }
  0x8d   :  { %v184_v40 = vpop.permute.xlu2 %183 }
  0x91   :  { %310 = vset.pattern.permute.xlu0 %v425_v14  ;;  %v62_v37 = vpop.permute.xlu1 %61 }
  0x92   :  { %123 = vperm.xlu0 %310, %v454_v0   ;;  %v64_v58 = vsel %vm59_vm4, %v62_v37, 0.0 }
  0x9a   :  { %313 = vset.pattern.permute.xlu0 %v426_v15  ;;  %v144_v39 = vpop.permute.xlu1 %143 }
  0x9b   :  { %169 = vperm.xlu0 %313, %v454_v0  }
  0xa3   :  { %322 = vset.pattern.permute.xlu0 %v428_v17  ;;  %v164_v41 = vpop.permute.xlu1 %163 }
  0xac   :  { %v482_v44 = vpop.permute.xlu1 %189 }
  0xf3   :  { %v82_v18 = vpop.permute.xlu0 %81 }
  0xf4   :  { %329 = vrcp.f32 %v82_v18  ;;  %v95_v22 = vand.u32 2147483648, %v82_v18  ;;  %v93_v24 = vand.u32 2147483647, %v82_v18  ;;  %vm89_vm1 = vweird.f32 %v82_v18 }
  0xf6   :  { %v96_v26 = vor.u32 1.1754944e-38, %v95_v22  ;;  %vm94_vm3 = vcmp.eq.f32.partialorder %v93_v24, 8.507059e+37 }
  0xfa   :  { %v330_v19 = vpop.eup %329 }
  0xfb   :  { %v85_v20 = vmul.f32 %v330_v19, %v82_v18  ;;  %vm90_vm0 = vweird.f32 %v330_v19  ;;  %v480_v43 = vpop.permute.xlu0 %66 }
  0xfc   :  { %vm91_vm2 = vmor %vm89_vm1, %vm90_vm0  ;;  %vm69_vm5 = vcmp.ge.f32.partialorder %v485_v46, %v480_v43  ;;  %vm192_vm1 = vcmp.lt.f32.partialorder %v485_v46, %v482_v44  ;;  %vm228_vm9 = vcmp.lt.f32.partialorder %v485_v46, %v480_v43 }
  0xfd   :  { %v86_v21 = vsub.f32 1.0, %v85_v20  ;;  %v74_v61 = vsel %vm69_vm5, %v72_v34, 0.0  ;;  %vm207_vm5 = vcmp.ge.f32.partialorder %v485_v46, %v482_v44 }
  0xfe   :  { %v75_v4 = vadd.f32 %v74_v61, %v64_v58 }
  0xff   :  { %v87_v23 = vmul.f32 %v330_v19, %v86_v21 }
 0x101   :  { %v88_v25 = vadd.f32 %v330_v19, %v87_v23 }
 0x103   :  { %v92_v27 = vsel %vm91_vm2, %v330_v19, %v88_v25 }
 0x104   :  { %v97_v28 = vsel %vm94_vm3, %v96_v26, %v92_v27  ;;  %v124_v50 = vpop.permute.xlu0 %123 }
 0x105   :  { %v98_v29 = vmul.f32 %v97_v28, %v79_v9 }
 0x107   :  { %198 = vperm.xlu0 %322, %v98_v29   ;;  %118 = vperm.xlu1 %318, %v98_v29  }
 0x108   :  { %102 = vperm.xlu2 %317, %v98_v29  }
 0x10f   :  { %319 = vset.pattern.permute.xlu1 %v422_v11 }
 0x110   :  { %320 = vset.pattern.permute.xlu2 %v427_v16  ;;  %138 = vperm.xlu1 %319, %v98_v29  }
 0x111   :  { %158 = vperm.xlu2 %320, %v98_v29  }
 0x118   :  { %323 = vset.pattern.permute.xlu1 %v429_v30 }
 0x119   :  { %321 = vset.pattern.permute.xlu2 %v430_v31  ;;  %209 = vperm.xlu1 %323, %v454_v0  }
 0x11a   :  { %178 = vperm.xlu2 %321, %v98_v29  }
 0x121   :  { %324 = vset.pattern.permute.xlu1 %v419_v6 }
 0x122   :  { %203 = vperm.xlu2 %321, %v454_v0   ;;  %218 = vperm.xlu1 %324, %v98_v29  }
 0x12a   :  { %325 = vset.pattern.permute.xlu2 %v428_v17  ;;  %v196_v17 = vsub.f32 %v485_v46, %v482_v44 }
 0x12b   :  { %223 = vperm.xlu2 %325, %v454_v0   ;;  %v170_v0 = vpop.permute.xlu0 %169 }
 0x12c   :  { %v176_v8 = vsub.f32 %v485_v46, %v170_v0  ;;  %vm172_vm0 = vcmp.lt.f32.partialorder %v485_v46, %v170_v0  ;;  %vm187_vm3 = vcmp.ge.f32.partialorder %v485_v46, %v170_v0 }
 0x12d   :  { %vm173_vm2 = vmand %vm167_vm15, %vm172_vm0 }
 0x12e   :  { %vm193_vm6 = vmand %vm187_vm3, %vm192_vm1 }
 0x162   :  { %v103_v42 = vpop.permute.xlu2 %102 }
 0x163   :  { %v105_v53 = vmul.f32 %v103_v42, %v99_v52 }
 0x165   :  { %v106_v56 = vadd.f32 %v105_v53, %v62_v37  ;;  %v328_v37 = vld [vmem:[#allocation5 + $0x12] ss:$0 sm:$0xff] }
 0x167   :  { %v114_v1 = vsel %vm113_vm10, %v106_v56, 0.0 }
 0x168   :  { %v115_v7 = vadd.f32 %v114_v1, %v75_v4 }
 0x16b   :  { %v159_v47 = vpop.permute.xlu2 %158 }
 0x16c   :  { %v161_v5 = vmul.f32 %v159_v47, %v156_v2 }
 0x16e   :  { %v166_v11 = vadd.f32 %v164_v41, %v161_v5 }
 0x170   :  { %v174_v18 = vsel %vm173_vm2, %v166_v11, 0.0 }
 0x174   :  { %v179_v59 = vpop.permute.xlu2 %178 }
 0x175   :  { %v181_v12 = vmul.f32 %v179_v59, %v176_v8 }
 0x177   :  { %v186_v19 = vadd.f32 %v184_v40, %v181_v12 }
 0x179   :  { %v119_v48 = vpop.permute.xlu1 %118  ;;  %v199_v14 = vpop.permute.xlu0 %198  ;;  %v194_v22 = vsel %vm193_vm6, %v186_v19, 0.0 }
 0x17a   :  { %v121_v55 = vmul.f32 %v119_v48, %v116_v54  ;;  %v201_v20 = vmul.f32 %v199_v14, %v196_v17 }
 0x17c   :  { %v126_v62 = vadd.f32 %v124_v50, %v121_v55  ;;  %v204_v15 = vpop.permute.xlu2 %203 }
 0x17d   :  { %v206_v23 = vadd.f32 %v204_v15, %v201_v20 }
 0x17e   :  { %v134_v6 = vsel %vm133_vm13, %v126_v62, 0.0 }
 0x17f   :  { %v135_v10 = vadd.f32 %v134_v6, %v115_v7 }
 0x182   :  { %v139_v60 = vpop.permute.xlu1 %138 }
 0x183   :  { %v141_v63 = vmul.f32 %v139_v60, %v136_v57 }
 0x185   :  { %v146_v3 = vadd.f32 %v144_v39, %v141_v63  ;;  %v224_v26 = vpop.permute.xlu2 %223 }
 0x187   :  { %v154_v9 = vsel %vm153_vm14, %v146_v3, 0.0 }
 0x188   :  { %v155_v16 = vadd.f32 %v154_v9, %v135_v10 }
 0x18a   :  { %v175_v21 = vadd.f32 %v174_v18, %v155_v16 }
 0x18b   :  { %v210_v13 = vpop.permute.xlu1 %209 }
 0x18c   :  { %vm212_vm4 = vcmp.lt.f32.partialorder %v485_v46, %v210_v13  ;;  %v216_v24 = vsub.f32 %v485_v46, %v210_v13  ;;  %v195_v27 = vadd.f32 %v194_v22, %v175_v21  ;;  %vm227_vm8 = vcmp.ge.f32.partialorder %v485_v46, %v210_v13 }
 0x18d   :  { %vm213_vm7 = vmand %vm207_vm5, %vm212_vm4 }
 0x18e   :  { %v214_v28 = vsel %vm213_vm7, %v206_v23, 0.0  ;;  %vm229_vm10 = vmand %vm227_vm8, %vm228_vm9 }
 0x18f   :  { %v215_v31 = vadd.f32 %v214_v28, %v195_v27 }
 0x194   :  { %v219_v25 = vpop.permute.xlu1 %218 }
 0x195   :  { %v221_v29 = vmul.f32 %v219_v25, %v216_v24 }
 0x197   :  { %v226_v30 = vadd.f32 %v224_v26, %v221_v29 }
 0x199   :  { %v230_v32 = vsel %vm229_vm10, %v226_v30, 0.0 }
 0x19a   :  { %v231_v34 = vadd.f32 %v230_v32, %v215_v31 }
 0x19c   :  { %279 = vmatmul.msk.f32.vlgmr.msra.gmra.mxu0 %vm234_vm11, %v231_v34 }
 0x219   :  { %v255_v38 = vpop.f32.mrf.mxu0 }
 0x21a   :  { %v256_v39 = vadd.f32 %v255_v38, %v233_v36 }
 0x21c   :  { %v259_v40 = vadd.f32 %v328_v37, %v256_v39 }
 0x21e   :  { %260 = vst [vmem:[#allocation7] sm:$0xff] %v259_v40 }
 0x21f   :  { %271 = dma.vmem_to_hbm [thread:$0]  %s267_s21, 128, %s269_s24, [#allocation4]  }
 0x220   :  { %407 = dma.done.wait [#allocation4], 128  }
 0x221   :  { %408 = vsyncadd [#allocation4], 4294967168 }
 0x222   :  { %276 = vsyncpa [#allocation3], 1 }
 0x223   :  { %277 = vsyncpa [#allocation6], 1 }
 0x224   :  { %278 = vsyncpa [#allocation4], 1 }

</bundles_post_ra>
